<compile_context>
chip_gen: v7x
topology: tpu7x:2x2x1
jax: 0.10.0
libtpu: 0.0.40
codegen_flags: <defaults>
</compile_context>

<pallas_src>
import functools

import jax
import jax.numpy as jnp
from jax.experimental import pallas as pl
from jax.experimental.pallas import tpu as pltpu

_SUBLANE = 8    # vreg sublane width (second-to-last dim granularity)


def _round_up(n, m):
    return ((n + m - 1) // m) * m


# ----------------------------- Pallas kernel --------------------------------
def _fused_mlp_kernel(*refs, activations, mxu_dtype):
    """One grid step: y = act_L(...act_1(x @ W1 + b1)...) for one batch tile.

    refs = (x_ref, w1_ref, b1_ref, ..., wL_ref, bL_ref, o_ref)
      x_ref : (TB, IN)        f32         (natural width, no lane padding)
      wi_ref: (IN_i, OUT_i)   mxu_dtype   pre-transposed (in, out)
      bi_ref: (1, OUT_i)      f32
      o_ref : (TB, OUT_L)     f32
    Intermediate activations never leave VMEM/vregs; only the final tile is
    written back to HBM, at its natural width.
    """
    x_ref, o_ref = refs[0], refs[-1]
    p_refs = refs[1:-1]

    y = x_ref[...]                      # f32
    for li, act in enumerate(activations):
        w = p_refs[2 * li][...]
        b = p_refs[2 * li + 1][...]
        # MXU matmul with f32 accumulation.  bf16 operands (default) are
        # MXU-native on v5e/v6e/v7x; the f32 path is kept for parity tests.
        y = jnp.dot(y.astype(mxu_dtype), w,
                    preferred_element_type=jnp.float32) + b
        if act == "relu":
            y = jnp.maximum(y, 0.0)
        elif act == "sigmoid":
            # One EUP transcendental instead of exp (EUP) + exact reciprocal
            # (VALU Newton iterations).
            y = 0.5 * (jnp.tanh(0.5 * y) + 1.0)
        elif act == "tanh":
            y = jnp.tanh(y)
        # act is None -> identity (matches `if item['active']:` being falsy)

    o_ref[...] = y.astype(o_ref.dtype)


def fused_mlp_forward(x, weights, biases, activations, *,
                      mxu_dtype=jnp.bfloat16,
                      max_batch_tile=1024,
                      min_grid_steps=2,
                      min_rows_per_step=256):
    """Run the whole layer stack in ONE pallas_call.

    x           : (B, IN) float
    weights     : list of (OUT_i, IN_i)  (PyTorch nn.Linear layout)
    biases      : list of (OUT_i,)
    activations : tuple of "relu" | "sigmoid" | "tanh" | None per layer
    mxu_dtype   : dtype fed to the MXU (bf16 default; f32 for tight parity)
    """
    x = jnp.asarray(x, jnp.float32)
    batch, in_f = x.shape
    n_layers = len(weights)
    assert len(biases) == n_layers and len(activations) == n_layers

    dims = [in_f] + [int(w.shape[0]) for w in weights]

    # ---- parameters: transpose once to (in, out); weights in MXU dtype ------
    params = []
    for li, (w, b) in enumerate(zip(weights, biases)):
        assert w.shape == (dims[li + 1], dims[li]), (w.shape, dims)
        params.append(jnp.asarray(w, jnp.float32).T.astype(mxu_dtype))
        params.append(jnp.asarray(b, jnp.float32).reshape(1, dims[li + 1]))

    # ---- batch tiling --------------------------------------------------------
    rows = _round_up(batch, _SUBLANE)
    tb = min(rows, max_batch_tile)
    # v7x has 2 TensorCores that shard "parallel" grid axes: when the batch is
    # big enough to amortize the ~0.35us/step overhead, make sure the grid has
    # at least `min_grid_steps` steps.  (v5e/v6e: harmless.)
    if rows // tb < min_grid_steps and rows >= min_grid_steps * min_rows_per_step:
        tb = _round_up(pl.cdiv(rows, min_grid_steps), _SUBLANE)
    batch_p = _round_up(batch, tb)

    # Pad the batch rows only if the batch isn't already tile-aligned; the
    # feature dims are never padded.
    if batch_p != batch:
        x_in = jnp.zeros((batch_p, in_f), jnp.float32).at[:batch].set(x)
    else:
        x_in = x

    grid = (batch_p // tb,)

    # Feature dims stay natural: a block dim equal to the full array dim is
    # always legal, so there is zero lane padding of input, weights or output.
    in_specs = [pl.BlockSpec((tb, in_f), lambda i: (i, 0))]
    for li in range(n_layers):
        din, dout = dims[li], dims[li + 1]
        in_specs.append(pl.BlockSpec((din, dout), lambda i: (0, 0)))   # weight
        in_specs.append(pl.BlockSpec((1, dout), lambda i: (0, 0)))     # bias
    out_spec = pl.BlockSpec((tb, dims[-1]), lambda i: (i, 0))
    # NOTE: weights/biases are grid-invariant; default double-buffering costs
    # only ~tens of KiB here.  For large nets, mark them pl.Buffered(1) or DMA
    # them once into scratch to halve their VMEM footprint.

    # ---- advisory cost estimate (lets XLA schedule around the call) ---------
    flops = 2 * batch_p * sum(dims[i] * dims[i + 1] for i in range(n_layers))
    transc = batch_p * sum(dims[i + 1] for i, a in enumerate(activations)
                           if a in ("sigmoid", "tanh"))
    bytes_acc = (x_in.size * x_in.dtype.itemsize
                 + batch_p * dims[-1] * 4
                 + sum(int(p.size) * p.dtype.itemsize for p in params))
    cost = pl.CostEstimate(flops=flops, transcendentals=transc,
                           bytes_accessed=bytes_acc)

    # ---- VMEM budget: only override the default when a big tile needs it ----
    w_bytes = sum(int(p.size) * p.dtype.itemsize for p in params)
    vmem_need = (2 * tb * (dims[0] + dims[-1]) * 4      # dbl-buffered in/out tiles
                 + 2 * w_bytes                          # dbl-buffered params
                 + 4 * tb * max(dims) * 4)              # intermediates headroom
    vmem_limit = None
    if vmem_need > (12 << 20):                          # v5e scoped default: 16 MiB
        vmem_limit = int(min(vmem_need + (8 << 20), 48 << 20))  # < v7x 64 MiB phys

    kernel = functools.partial(_fused_mlp_kernel,
                               activations=tuple(activations),
                               mxu_dtype=mxu_dtype)
    y = pl.pallas_call(
        kernel,
        out_shape=jax.ShapeDtypeStruct((batch_p, dims[-1]), jnp.float32),
        grid=grid,
        in_specs=in_specs,
        out_specs=out_spec,
        compiler_params=pltpu.CompilerParams(
            dimension_semantics=("parallel",),   # batch grid shards across TCs
            vmem_limit_bytes=vmem_limit),
        cost_estimate=cost,
    )(x_in, *params)

    return y[:batch] if batch_p != batch else y


# --------------------------- CPTNetBase in JAX -------------------------------
class CPTNetBaseJax:
    """JAX mirror of CPTNetBase: a list of {method, active, param} layers.

    `forward` runs the whole stack through the single fused Pallas kernel;
    the per-layer `method`/`active` callables are kept for API parity and as
    the pure-JAX reference path (identical semantics).
    """

    def __init__(self, mxu_dtype=jnp.bfloat16):
        self.m_layer = []
        self.mxu_dtype = mxu_dtype

    def Add_Layer(self, method, active, params, name="", active_name=None):
        layer = {}
        layer["name"] = name if name else ("L_%d" % len(self.m_layer))
        layer["method"] = method            # callable (reference path)
        layer["active"] = active            # callable or None (reference path)
        layer["active_name"] = active_name  # static tag for the fused kernel
        layer["param"] = list(params)       # (W (OUT,IN), b (OUT,))
        self.m_layer.append(layer)

    def Get_Model(self):
        return self.m_layer

    def forward(self, in_data, mxu_dtype=None):
        weights = [l["param"][0] for l in self.m_layer]
        biases = [l["param"][1] for l in self.m_layer]
        acts = tuple(l["active_name"] for l in self.m_layer)
        return fused_mlp_forward(
            in_data, weights, biases, acts,
            mxu_dtype=self.mxu_dtype if mxu_dtype is None else mxu_dtype)

    def __call__(self, in_data):
        return self.forward(in_data)

    def Predict(self, in_data):
        return self(in_data)

    # TODO(synk): Train/Set_Loss/Set_Optimizer/Save/Load/Get_Info are host-side
    # training & serialization utilities with no Pallas equivalent.


_ACT_FNS = {
    "relu": lambda v: jnp.maximum(v, 0.0),
    "sigmoid": lambda v: 1.0 / (1.0 + jnp.exp(-v)),
    "tanh": jnp.tanh,
    None: None,
}


def _init_linear_params(key, out_f, in_f):
    """Deterministic nn.Linear-style init (uniform in +-1/sqrt(in_f))."""
    kw, kb = jax.random.split(key)
    bound = 1.0 / jnp.sqrt(jnp.float32(in_f))
    w = jax.random.uniform(kw, (out_f, in_f), jnp.float32, -bound, bound)
    b = jax.random.uniform(kb, (out_f,), jnp.float32, -bound, bound)
    return w, b


def build_net(key):
    """Concrete CPTNetBase instance: 32 -> 64 -> 32 -> 16 (relu/relu/sigmoid)."""
    net = CPTNetBaseJax()
    dims = [(64, 32, "relu"), (32, 64, "relu"), (16, 32, "sigmoid")]
    keys = jax.random.split(key, len(dims))
    for k, (out_f, in_f, act) in zip(keys, dims):
        w, b = _init_linear_params(k, out_f, in_f)
        method = functools.partial(lambda v, w=w, b=b: v @ w.T + b)  # weighted sum
        net.Add_Layer(method=method, active=_ACT_FNS[act], params=(w, b),
                      active_name=act)
    return net


def reference_forward(x, net):
    """Pure-jnp reference: the literal CPTNetBase.forward loop over layers."""
    out = x
    for item in net.m_layer:
        out = item["method"](out)
        if item["active"]:
            out = item["active"](out)
    return out


if __name__ == "__main__":
    key = jax.random.PRNGKey(0)
    k_in, k_net = jax.random.split(key)

    batch, in_features = 8, 32
    x = jax.random.normal(k_in, (batch, in_features), jnp.float32)

    net = build_net(k_net)
    ref = reference_forward(x, net)

    # f32-MXU path: tight parity with the reference layer loop.
    predict_f32 = jax.jit(functools.partial(net.forward, mxu_dtype=jnp.float32))
    out_f32 = jax.block_until_ready(predict_f32(x))
    assert out_f32.shape == (batch, 16), out_f32.shape
    assert jnp.allclose(out_f32, ref, atol=2e-5, rtol=2e-5), (
        float(jnp.max(jnp.abs(out_f32 - ref))))

    # bf16-MXU path (default): MXU-native operands, f32 accumulation.
    predict = jax.jit(net.Predict)
    out = jax.block_until_ready(predict(x))
    assert out.shape == (batch, 16), out.shape
    assert jnp.allclose(out, ref, atol=2e-2, rtol=2e-2), (
        float(jnp.max(jnp.abs(out - ref))))

    print("KERNEL_OK")
</pallas_src>

<mosaic_0001>
module attributes {stable_mosaic.version = 11 : i64} {
  func.func @_fused_mlp_kernel(%arg0: i32, %arg1: memref<8x32xf32, #tpu.memory_space<vmem>>, %arg2: memref<32x64xf32, #tpu.memory_space<vmem>>, %arg3: memref<1x64xf32, #tpu.memory_space<vmem>>, %arg4: memref<64x32xf32, #tpu.memory_space<vmem>>, %arg5: memref<1x32xf32, #tpu.memory_space<vmem>>, %arg6: memref<32x16xf32, #tpu.memory_space<vmem>>, %arg7: memref<1x16xf32, #tpu.memory_space<vmem>>, %arg8: memref<8x16xf32, #tpu.memory_space<vmem>>) attributes {dimension_semantics = [#tpu.dimension_semantics<parallel>], iteration_bounds = array<i64: 1>, scalar_prefetch = 0 : i64, scratch_operands = 0 : i64, tpu.core_type = #tpu.core_type<tc>, window_params = [{transform_indices = @transform_0, window_bounds = array<i64: 8, 32>}, {pipeline_mode = #tpu.pipeline_mode<synchronous>, transform_indices = @transform_1, window_bounds = array<i64: 32, 64>}, {pipeline_mode = #tpu.pipeline_mode<synchronous>, transform_indices = @transform_2, window_bounds = array<i64: 1, 64>}, {pipeline_mode = #tpu.pipeline_mode<synchronous>, transform_indices = @transform_3, window_bounds = array<i64: 64, 32>}, {pipeline_mode = #tpu.pipeline_mode<synchronous>, transform_indices = @transform_4, window_bounds = array<i64: 1, 32>}, {pipeline_mode = #tpu.pipeline_mode<synchronous>, transform_indices = @transform_5, window_bounds = array<i64: 32, 16>}, {pipeline_mode = #tpu.pipeline_mode<synchronous>, transform_indices = @transform_6, window_bounds = array<i64: 1, 16>}, {transform_indices = @transform_7, window_bounds = array<i64: 8, 16>}]} {
    %c0 = arith.constant 0 : index
    %c0_0 = arith.constant 0 : index
    %0 = vector.load %arg1[%c0, %c0_0] : memref<8x32xf32, #tpu.memory_space<vmem>>, vector<8x32xf32>
    %c0_1 = arith.constant 0 : index
    %c0_2 = arith.constant 0 : index
    %1 = vector.load %arg2[%c0_1, %c0_2] : memref<32x64xf32, #tpu.memory_space<vmem>>, vector<32x64xf32>
    %c0_3 = arith.constant 0 : index
    %c0_4 = arith.constant 0 : index
    %2 = vector.load %arg3[%c0_3, %c0_4] : memref<1x64xf32, #tpu.memory_space<vmem>>, vector<1x64xf32>
    %cst = arith.constant dense<0.000000e+00> : vector<8x64xf32>
    %3 = tpu.matmul %0, %1, %cst {dimension_numbers = #tpu.dot_dimension_numbers<[1], [0], [0], [1], [0, 0, 1, 1], [], []>} : vector<8x32xf32>, vector<32x64xf32>, vector<8x64xf32> -> vector<8x64xf32>
    %4 = vector.broadcast %2 : vector<1x64xf32> to vector<8x64xf32>
    %5 = arith.addf %3, %4 : vector<8x64xf32>
    %cst_5 = arith.constant 0.000000e+00 : f32
    %6 = vector.broadcast %cst_5 : f32 to vector<8x64xf32>
    %7 = arith.maximumf %5, %6 : vector<8x64xf32>
    %c0_6 = arith.constant 0 : index
    %c0_7 = arith.constant 0 : index
    %8 = vector.load %arg4[%c0_6, %c0_7] : memref<64x32xf32, #tpu.memory_space<vmem>>, vector<64x32xf32>
    %c0_8 = arith.constant 0 : index
    %c0_9 = arith.constant 0 : index
    %9 = vector.load %arg5[%c0_8, %c0_9] : memref<1x32xf32, #tpu.memory_space<vmem>>, vector<1x32xf32>
    %cst_10 = arith.constant dense<0.000000e+00> : vector<8x32xf32>
    %10 = tpu.matmul %7, %8, %cst_10 {dimension_numbers = #tpu.dot_dimension_numbers<[1], [0], [0], [1], [0, 0, 1, 1], [], []>} : vector<8x64xf32>, vector<64x32xf32>, vector<8x32xf32> -> vector<8x32xf32>
    %11 = vector.broadcast %9 : vector<1x32xf32> to vector<8x32xf32>
    %12 = arith.addf %10, %11 : vector<8x32xf32>
    %cst_11 = arith.constant 0.000000e+00 : f32
    %13 = vector.broadcast %cst_11 : f32 to vector<8x32xf32>
    %14 = arith.maximumf %12, %13 : vector<8x32xf32>
    %c0_12 = arith.constant 0 : index
    %c0_13 = arith.constant 0 : index
    %15 = vector.load %arg6[%c0_12, %c0_13] : memref<32x16xf32, #tpu.memory_space<vmem>>, vector<32x16xf32>
    %c0_14 = arith.constant 0 : index
    %c0_15 = arith.constant 0 : index
    %16 = vector.load %arg7[%c0_14, %c0_15] : memref<1x16xf32, #tpu.memory_space<vmem>>, vector<1x16xf32>
    %cst_16 = arith.constant dense<0.000000e+00> : vector<8x16xf32>
    %17 = tpu.matmul %14, %15, %cst_16 {dimension_numbers = #tpu.dot_dimension_numbers<[1], [0], [0], [1], [0, 0, 1, 1], [], []>} : vector<8x32xf32>, vector<32x16xf32>, vector<8x16xf32> -> vector<8x16xf32>
    %18 = vector.broadcast %16 : vector<1x16xf32> to vector<8x16xf32>
    %19 = arith.addf %17, %18 : vector<8x16xf32>
    %cst_17 = arith.constant 5.000000e-01 : f32
    %20 = vector.broadcast %cst_17 : f32 to vector<8x16xf32>
    %21 = arith.mulf %20, %19 : vector<8x16xf32>
    %22 = math.tanh %21 : vector<8x16xf32>
    %cst_18 = arith.constant 1.000000e+00 : f32
    %23 = vector.broadcast %cst_18 : f32 to vector<8x16xf32>
    %24 = arith.addf %22, %23 : vector<8x16xf32>
    %cst_19 = arith.constant 5.000000e-01 : f32
    %25 = vector.broadcast %cst_19 : f32 to vector<8x16xf32>
    %26 = arith.mulf %25, %24 : vector<8x16xf32>
    %c0_20 = arith.constant 0 : index
    %c0_21 = arith.constant 0 : index
    %27 = vector.load %arg8[%c0_20, %c0_21] : memref<8x16xf32, #tpu.memory_space<vmem>>, vector<8x16xf32>
    tpu.vector_store %arg8[%c0_20, %c0_21], %26 {strides = array<i32>} : memref<8x16xf32, #tpu.memory_space<vmem>>, vector<8x16xf32>,
    return
  }
  func.func @transform_0(%arg0: i32) -> (i32, i32) {
    %c0_i32 = arith.constant 0 : i32
    %c0_i32_0 = arith.constant 0 : i32
    return %arg0, %c0_i32 : i32, i32
  }
  func.func @transform_1(%arg0: i32) -> (i32, i32) {
    %c0_i32 = arith.constant 0 : i32
    %c0_i32_0 = arith.constant 0 : i32
    %c0_i32_1 = arith.constant 0 : i32
    return %c0_i32, %c0_i32_0 : i32, i32
  }
  func.func @transform_2(%arg0: i32) -> (i32, i32) {
    %c0_i32 = arith.constant 0 : i32
    %c0_i32_0 = arith.constant 0 : i32
    %c0_i32_1 = arith.constant 0 : i32
    return %c0_i32, %c0_i32_0 : i32, i32
  }
  func.func @transform_3(%arg0: i32) -> (i32, i32) {
    %c0_i32 = arith.constant 0 : i32
    %c0_i32_0 = arith.constant 0 : i32
    %c0_i32_1 = arith.constant 0 : i32
    return %c0_i32, %c0_i32_0 : i32, i32
  }
  func.func @transform_4(%arg0: i32) -> (i32, i32) {
    %c0_i32 = arith.constant 0 : i32
    %c0_i32_0 = arith.constant 0 : i32
    %c0_i32_1 = arith.constant 0 : i32
    return %c0_i32, %c0_i32_0 : i32, i32
  }
  func.func @transform_5(%arg0: i32) -> (i32, i32) {
    %c0_i32 = arith.constant 0 : i32
    %c0_i32_0 = arith.constant 0 : i32
    %c0_i32_1 = arith.constant 0 : i32
    return %c0_i32, %c0_i32_0 : i32, i32
  }
  func.func @transform_6(%arg0: i32) -> (i32, i32) {
    %c0_i32 = arith.constant 0 : i32
    %c0_i32_0 = arith.constant 0 : i32
    %c0_i32_1 = arith.constant 0 : i32
    return %c0_i32, %c0_i32_0 : i32, i32
  }
  func.func @transform_7(%arg0: i32) -> (i32, i32) {
    %c0_i32 = arith.constant 0 : i32
    %c0_i32_0 = arith.constant 0 : i32
    return %arg0, %c0_i32 : i32, i32
  }
}

</mosaic_0001>

<bundles_post_ra>
// kernel: forward.1
= control target key start
LH: loop header
LB: loop body
LE: loop exit
PB: predicated region body
PF: predicated region fallthrough
CT: control target
= control target key end

     0   :  { %12 = vsyncpa [#allocation3], 0  ;;  %s717_s0 = inlined_call_operand.hbm [shape: f32[8,32], index: 0, kind: input, shape index: {}]   ;;  %s718_s1 = inlined_call_operand.hbm [shape: f32[32,64], index: 1, kind: input, shape index: {}]   ;;  %s719_s2 = inlined_call_operand.vmem [shape: f32[1,64], index: 2, kind: input, shape index: {}]   ;;  %s720_s3 = inlined_call_operand.hbm [shape: f32[64,32], index: 3, kind: input, shape index: {}]   ;;  %s721_s4 = inlined_call_operand.vmem [shape: f32[1,32], index: 4, kind: input, shape index: {}]   ;;  %s722_s5 = inlined_call_operand.hbm [shape: f32[32,16], index: 5, kind: input, shape index: {}]   ;;  %s723_s6 = inlined_call_operand.vmem [shape: f32[1,16], index: 6, kind: input, shape index: {}]   ;;  %s724_s7 = inlined_call_operand.hbm [shape: f32[8,16], index: 7, kind: output, shape index: {}]  }
   0x1   :  { %13 = vsyncpa [#allocation6], 0 }
   0x2   :  { %14 = vsyncpa [#allocation9], 0 }
   0x3   :  { %15 = vsyncpa [#allocation4], 0  ;;  %s584_s24 = smov [#allocation5]   ;;  %s466_s28 = scalar_lea.hbm %s718_s1, 512 }
   0x4   :  { %s31_s25 = sshll.u32 %s584_s24, 4  ;;  %p467_p0 = scmp.ne.s32.totalorder %s718_s1, %s466_s28  ;;  %s32_s25 = int_to_ptr.vmem [resolvable:$true] %s31_s25 }
   0x5   :  { %p470_p1 = scmp.lt.u32.totalorder %s466_s28, %s718_s1 }
   0x7   :  { %p472_p2 = pnand %p470_p1, %p467_p0 }
   0x9   :  { %475 = shalt.err (!%p472_p2)
}
   0xa   :  { %s476_s10 = scalar_lea.vmem %s32_s25, 512  ;;  %p481_p4 = scmp.lt.s32.totalorder %s32_s25, %s32_s25 }
   0xb   :  { %p477_p3 = scmp.ne.s32.totalorder %s32_s25, %s476_s10  ;;  %p482_p5 = scmp.lt.s32.totalorder %s476_s10, %s476_s10 }
   0xd   :  { %p483_p6 = por %p482_p5, %p481_p4 }
   0xf   :  { %p484_p7 = pnand %p483_p6, %p477_p3 }
  0x11   :  { %487 = shalt.err (!%p484_p7)
}
  0x12   :  { %s585_s11 = smov 128   ;;  %s586_s12 = smov 8  }
  0x13   :  { %37 = dma.hbm_to_vmem [thread:$0]  %s718_s1, 512, %s32_s25, [#allocation6], %s585_s11, %s585_s11, %s586_s12  }
  0x14   :  { %s587_s15 = smov [#allocation2]   ;;  %s588_s17 = smov [#allocation7]  }
  0x15   :  { %s22_s16 = sshll.u32 %s587_s15, 4  ;;  %s45_s18 = sshll.u32 %s588_s17, 4  ;;  %s23_s16 = int_to_ptr.vmem [resolvable:$true] %s22_s16  ;;  %s46_s18 = int_to_ptr.vmem [resolvable:$true] %s45_s18 }
  0x16   :  { %s488_s21 = scalar_lea.hbm %s717_s0, 128 }
  0x17   :  { %p489_p8 = scmp.ne.s32.totalorder %s717_s0, %s488_s21  ;;  %p492_p9 = scmp.lt.u32.totalorder %s488_s21, %s717_s0 }
  0x19   :  { %p494_p10 = pnand %p492_p9, %p489_p8 }
  0x1b   :  { %497 = shalt.err (!%p494_p10)
}
  0x1c   :  { %s498_s1 = scalar_lea.vmem %s23_s16, 128  ;;  %p503_p12 = scmp.lt.s32.totalorder %s23_s16, %s23_s16 }
  0x1d   :  { %p499_p11 = scmp.ne.s32.totalorder %s23_s16, %s498_s1  ;;  %p504_p13 = scmp.lt.s32.totalorder %s498_s1, %s498_s1 }
  0x1f   :  { %p505_p0 = por %p504_p13, %p503_p12 }
  0x21   :  { %p506_p1 = pnand %p505_p0, %p499_p11 }
  0x23   :  { %509 = shalt.err (!%p506_p1)
}
  0x24   :  { %25 = dma.hbm_to_vmem [thread:$0]  %s717_s0, 128, %s23_s16, [#allocation3]  }
  0x25   :  { %s510_s30 = scalar_lea.hbm %s720_s3, 1024 }
  0x26   :  { %p511_p2 = scmp.ne.s32.totalorder %s720_s3, %s510_s30  ;;  %p514_p3 = scmp.lt.u32.totalorder %s510_s30, %s720_s3 }
  0x28   :  { %p516_p4 = pnand %p514_p3, %p511_p2 }
  0x2a   :  { %519 = shalt.err (!%p516_p4)
}
  0x2b   :  { %s520_s14 = scalar_lea.vmem %s46_s18, 1024  ;;  %p525_p6 = scmp.lt.s32.totalorder %s46_s18, %s46_s18 }
  0x2c   :  { %p521_p5 = scmp.ne.s32.totalorder %s46_s18, %s520_s14  ;;  %p526_p7 = scmp.lt.s32.totalorder %s520_s14, %s520_s14 }
  0x2e   :  { %p527_p8 = por %p526_p7, %p525_p6 }
  0x30   :  { %p528_p9 = pnand %p527_p8, %p521_p5 }
  0x32   :  { %531 = shalt.err (!%p528_p9)
}
  0x33   :  { %51 = dma.hbm_to_vmem [thread:$0]  %s720_s3, 1024, %s46_s18, [#allocation6], %s585_s11, %s585_s11, %s586_s12  }
  0x34   :  { %s589_s16 = smov [#allocation8]   ;;  %s532_s21 = scalar_lea.hbm %s722_s5, 512 }
  0x35   :  { %s59_s17 = sshll.u32 %s589_s16, 4  ;;  %p533_p10 = scmp.ne.s32.totalorder %s722_s5, %s532_s21  ;;  %s60_s17 = int_to_ptr.vmem [resolvable:$true] %s59_s17 }
  0x36   :  { %p536_p11 = scmp.lt.u32.totalorder %s532_s21, %s722_s5 }
  0x38   :  { %p538_p12 = pnand %p536_p11, %p533_p10 }
  0x3a   :  { %541 = shalt.err (!%p538_p12)
}
  0x3b   :  { %s542_s1 = scalar_lea.vmem %s60_s17, 512  ;;  %p547_p0 = scmp.lt.s32.totalorder %s60_s17, %s60_s17 }
  0x3c   :  { %p543_p13 = scmp.ne.s32.totalorder %s60_s17, %s542_s1  ;;  %p548_p1 = scmp.lt.s32.totalorder %s542_s1, %s542_s1 }
  0x3e   :  { %p549_p2 = por %p548_p1, %p547_p0 }
  0x40   :  { %p550_p3 = pnand %p549_p2, %p543_p13 }
  0x42   :  { %553 = shalt.err (!%p550_p3)
}
  0x43   :  { %65 = dma.hbm_to_vmem [thread:$0]  %s722_s5, 512, %s60_s17, [#allocation9], %s585_s11, %s585_s11, %s586_s12  }
  0x44   :  { %576 = dma.done.wait [#allocation3], 128  }
  0x45   :  { %577 = vsyncadd [#allocation3], 4294967168 }
  0x46   :  { %578 = dma.done.wait [#allocation6], 1536  }
  0x47   :  { %579 = vsyncadd [#allocation6], 4294965760 }
  0x48   :  { %580 = dma.done.wait [#allocation9], 512  }
  0x49   :  { %581 = vsyncadd [#allocation9], 4294966784  ;;  %v590_v0 = vmov 0.0|0.0   ;;  %vm591_vm0 = vmmov 0   ;;  %v592_v1 = vmov 0.0   ;;  %v81_v2 = vld [vmem:[#allocation5] sm:$0xff] }
  0x4a   :  { %430 = vmatprep.subr.bf16.mxu0 %v590_v0  ;;  %397 = vmatprep.mubr.msk.f32.mxu0 %vm591_vm0, %v592_v1  ;;  %v82_v3 = vld [vmem:[#allocation5 + $0x8] sm:$0xff]  ;;  %v83_v4 = vld [vmem:[#allocation5 + $0x10] sm:$0xff]  ;;  %v84_v6 = vld [vmem:[#allocation5 + $0x18] sm:$0xff]  ;;  %vm92_vm1 = vcmask 261120   ;;  %vm182_vm2 = vcmask 523264   ;;  %s593_s28 = smov [#allocation10]  }
  0x4b   :  { %436 = vmatprep.subr.bf16.mxu1 %v590_v0  ;;  %416 = vmatprep.mubr.msk.f32.mxu1 %vm591_vm0, %v592_v1  ;;  %v431_v5 = vpack.c.bf16 %v82_v3, %v81_v2  ;;  %v167_v7 = vld [vmem:[#allocation7] sm:$0xff]  ;;  %v168_v8 = vld [vmem:[#allocation7 + $0x8] sm:$0xff]  ;;  %v169_v9 = vld [vmem:[#allocation7 + $0x10] sm:$0xff]  ;;  %v434_v11 = vpack.c.bf16 %v84_v6, %v83_v4  ;;  %s353_s29 = sshll.u32 %s593_s28, 4  ;;  %vm345_vm3 = vcmask 130048   ;;  %s354_s29 = int_to_ptr.vmem [resolvable:$true] %s353_s29 }
  0x4c   :  { %v170_v10 = vld [vmem:[#allocation7 + $0x18] sm:$0xff]  ;;  %v437_v12 = vpack.c.bf16 %v168_v8, %v167_v7  ;;  %v171_v14 = vld [vmem:[#allocation7 + $0x20] sm:$0xff]  ;;  %v172_v15 = vld [vmem:[#allocation7 + $0x28] sm:$0xff]  ;;  %p559_p5 = scmp.lt.s32.totalorder %s354_s29, %s354_s29 }
  0x4d   :  { %432 = vmatpush3.bf16.msra.mxu0 %v431_v5  ;;  %v440_v13 = vpack.c.bf16 %v170_v10, %v169_v9  ;;  %v80_v16 = vld [vmem:[#allocation2] sm:$0xff]  ;;  %v443_v17 = vpack.c.bf16 %v172_v15, %v171_v14  ;;  %v173_v18 = vld [vmem:[#allocation7 + $0x30] sm:$0xff]  ;;  %v257_v21 = vld [vmem:[#allocation8] sm:$0xff] }
  0x4e   :  { %433 = vmatprep.subr.bf16.mxu0 %v590_v0  ;;  %438 = vmatpush3.bf16.msra.mxu1 %v437_v12  ;;  %v174_v19 = vld [vmem:[#allocation7 + $0x38] sm:$0xff]  ;;  %v258_v22 = vld [vmem:[#allocation8 + $0x8] sm:$0xff]  ;;  %v259_v29 = vld [vmem:[#allocation8 + $0x10] sm:$0xff] }
  0x4f   :  { %439 = vmatprep.subr.bf16.mxu1 %v590_v0  ;;  %v446_v20 = vpack.c.bf16 %v174_v19, %v173_v18  ;;  %v449_v23 = vpack.c.bf16 %v258_v22, %v257_v21  ;;  %v364_v24 = vld [vmem:[%s719_s2] ss:$0 sm:$0xff] }
  0x50   :  { %v260_v30 = vld [vmem:[#allocation8 + $0x18] sm:$0xff] }
  0x51   :  { %435 = vmatpush3.bf16.msra.mxu0 %v434_v11  ;;  %v452_v31 = vpack.c.bf16 %v260_v30, %v259_v29  ;;  %v366_v32 = vld [vmem:[%s721_s4] ss:$0 sm:$0xff]  ;;  %s554_s4 = scalar_lea.vmem %s354_s29, 128 }
  0x52   :  { %448 = vmatprep.subr.bf16.mxu0 %v590_v0  ;;  %441 = vmatpush3.bf16.msra.mxu1 %v440_v13  ;;  %v368_v37 = vld [vmem:[%s723_s6] ss:$0 sm:$0xff]  ;;  %p555_p4 = scmp.ne.s32.totalorder %s354_s29, %s554_s4  ;;  %p560_p6 = scmp.lt.s32.totalorder %s554_s4, %s554_s4 }
  0x53   :  { %442 = vmatprep.subr.bf16.mxu1 %v590_v0 }
  0x54   :  { %398 = vmatmul.mubr.msk.f32.vlgmr.msra.gmra.mrb[0].mxu0 %vm92_vm1, %v80_v16  ;;  %p561_p7 = por %p560_p6, %p559_p5 }
  0x55   :  { %427 = vmatprep.mubr.msk.f32.mxu0 %vm591_vm0, %v592_v1  ;;  %450 = vmatpush3.bf16.msra.mxu0 %v449_v23 }
  0x56   :  { %444 = vmatpush3.bf16.msra.mxu1 %v443_v17  ;;  %451 = vmatprep.subr.bf16.mxu0 %v590_v0  ;;  %p562_p8 = pnand %p561_p7, %p555_p4 }
  0x57   :  { %445 = vmatprep.subr.bf16.mxu1 %v590_v0 }
  0x59   :  { %453 = vmatpush3.bf16.msra.mxu0 %v452_v31 }
  0x5a   :  { %447 = vmatpush3.bf16.msra.mxu1 %v446_v20 }
 0x127   :  { %v162_v25 = vpop.f32.mrb[0].mxu0 }
 0x128   :  { %v163_v26 = vadd.f32 %v364_v24, %v162_v25  ;;  %v399_v27 = vpop.f32.mrb[1].mxu0 }
 0x12a   :  { %v166_v28 = vmax.f32 %v163_v26, 0.0 }
 0x12c   :  { %417 = vmatmul.mubr.msk.f32.vlgmr.msra.gmra.mrb[0].mxu1 %vm182_vm2, %v166_v28 }
 0x1ff   :  { %v252_v33 = vpop.f32.mrb[0].mxu1 }
 0x200   :  { %v253_v34 = vadd.f32 %v366_v32, %v252_v33  ;;  %v418_v35 = vpop.f32.mrb[1].mxu1 }
 0x202   :  { %v256_v36 = vmax.f32 %v253_v34, 0.0 }
 0x204   :  { %428 = vmatmul.mubr.msk.f32.vlgmr.msra.gmra.mrb[2].mxu0 %vm92_vm1, %v256_v36 }
 0x2d7   :  { %v337_v38 = vpop.f32.mrb[2].mxu0 }
 0x2d8   :  { %v338_v39 = vadd.f32 %v368_v37, %v337_v38  ;;  %v429_v40 = vpop.f32.mrb[3].mxu0 }
 0x2da   :  { %v341_v41 = vmul.f32 0.5, %v338_v39 }
 0x2dc   :  { %464 = vtanh.f32 %v341_v41 }
 0x2e6   :  { %v465_v42 = vpop.eup %464 }
 0x2e7   :  { %v343_v43 = vadd.f32 1.0, %v465_v42 }
 0x2e9   :  { %v344_v44 = vmul.f32 0.5, %v343_v43 }
 0x2eb   :  { %346 = vst.msk [vmem:[#allocation10] sm:$0xff] %vm345_vm3, %v344_v44 }
 0x2ec   :  { %565 = shalt.err (!%p562_p8)
}
 0x2ed   :  { %s566_s8 = scalar_lea.hbm %s724_s7, 128 }
 0x2ee   :  { %p567_p9 = scmp.ne.s32.totalorder %s724_s7, %s566_s8  ;;  %p570_p10 = scmp.lt.u32.totalorder %s566_s8, %s724_s7 }
 0x2f0   :  { %p572_p11 = pnand %p570_p10, %p567_p9 }
 0x2f2   :  { %575 = shalt.err (!%p572_p11)
}
 0x2f3   :  { %356 = dma.vmem_to_hbm [thread:$0]  %s354_s29, 128, %s724_s7, [#allocation4]  }
 0x2f4   :  { %582 = dma.done.wait [#allocation4], 128  }
 0x2f5   :  { %583 = vsyncadd [#allocation4], 4294967168 }
 0x2f6   :  { %360 = vsyncpa [#allocation3], 1 }
 0x2f7   :  { %361 = vsyncpa [#allocation6], 1 }
 0x2f8   :  { %362 = vsyncpa [#allocation9], 1 }
 0x2f9   :  { %363 = vsyncpa [#allocation4], 1 }

</bundles_post_ra>
